<compile_context>
chip_gen: v5e
topology: v5e:2x2
jax: 0.10.0
libtpu: 0.0.40
codegen_flags: <defaults>
</compile_context>

<pallas_src>
import functools

import jax
import jax.numpy as jnp
from jax.experimental import pallas as pl
from jax.experimental.pallas import tpu as pltpu


def _round_up(x, m):
    return ((x + m - 1) // m) * m


def _activation(x, kind):
    if kind == "relu":
        return jnp.maximum(x, 0.0)
    elif kind == "tanh":
        return jnp.tanh(x)
    raise ValueError(f"unsupported activation: {kind}")


def _mlp_kernel(*refs, num_layers, activation, compute_dtype):
    """Fused MLP forward over one batch tile.

    refs = (x_ref, w0_ref, b0_ref, w1_ref, b1_ref, ..., o_ref)
    x/o are (TM, features) batch tiles pipelined by the BlockSpec machinery;
    weights/biases are whole arrays kept VMEM-resident via constant index_maps.
    """
    x_ref = refs[0]
    o_ref = refs[-1]
    params = refs[1:-1]

    x = x_ref[...]                          # (TM, in) already in compute_dtype
    for i in range(num_layers):
        if i:  # matches PyTorch: activation + dropout only for i > 0
            # Activation / bias math stays f32 (v5e VPU/EUP have no bf16 path);
            # only the MXU operands are cast to compute_dtype.
            x = _activation(x, activation)
            # TODO(synk): Dropout is identity in eval mode; training-mode random
            # masking (pltpu.prng_*) is intentionally omitted here.
            x = x.astype(compute_dtype)
        w = params[2 * i][...]               # (in_i, out_i) compute_dtype
        b = params[2 * i + 1][...]           # (1, out_i)   float32
        x = jnp.dot(x, w, preferred_element_type=jnp.float32) + b
    o_ref[...] = x.astype(o_ref.dtype)


def simple_mlp_forward(x, weights, biases, activation="relu",
                       compute_dtype=jnp.float32, block_m=512):
    """Run the fused MLP Pallas kernel.

    x:       (batch, input_size) float32
    weights: list of (in_i, out_i) float32 arrays (pre-transposed vs torch Linear)
    biases:  list of (out_i,) float32 arrays
    """
    num_layers = len(weights)
    batch, input_size = x.shape
    out_dim = weights[-1].shape[1]

    # Lane-dense output: pad the final layer's out-features to a multiple of 128
    # so the output store is a full-lane (unmasked) vst; slice back outside.
    out_pad = _round_up(out_dim, 128)
    w_last = jnp.zeros((weights[-1].shape[0], out_pad), weights[-1].dtype)
    w_last = w_last.at[:, :out_dim].set(weights[-1])
    b_last = jnp.zeros((out_pad,), biases[-1].dtype).at[:out_dim].set(biases[-1])
    weights = list(weights[:-1]) + [w_last]
    biases = list(biases[:-1]) + [b_last]

    # Batch tile: as large as fits (512 rows f32 ~85% of HBM roofline), rounded
    # so the block evenly tiles the (padded) batch.
    tm = min(block_m, _round_up(batch, 8))
    padded_batch = _round_up(batch, tm)
    if padded_batch != batch:
        x = jnp.pad(x, ((0, padded_batch - batch), (0, 0)))

    # MXU operand dtype; biases & accumulation stay f32.
    x = x.astype(compute_dtype)
    weights = [w.astype(compute_dtype) for w in weights]
    biases = [b.astype(jnp.float32).reshape(1, -1) for b in biases]

    args = [x]
    in_specs = [pl.BlockSpec((tm, input_size), lambda i: (i, 0))]
    for w, b in zip(weights, biases):
        args.append(w)
        in_specs.append(pl.BlockSpec(w.shape, lambda i: (0, 0)))   # VMEM-resident
        args.append(b)
        in_specs.append(pl.BlockSpec(b.shape, lambda i: (0, 0)))   # VMEM-resident
    out_spec = pl.BlockSpec((tm, out_pad), lambda i: (i, 0))

    # Explicit VMEM budget: double-buffered x/out tiles + resident params +
    # intermediate activations (keeps us honest on v7x's 64 MiB / v5e's 16 MiB).
    itemsize = jnp.dtype(compute_dtype).itemsize
    widths = [w.shape[1] for w in weights]
    max_width = max([input_size] + widths)
    io_bytes = tm * input_size * itemsize + tm * out_pad * 4
    param_bytes = (sum(w.size * itemsize for w in weights)
                   + sum(b.size * 4 for b in biases))
    act_bytes = tm * max_width * 4
    budget = 4 * io_bytes + 2 * param_bytes + 4 * act_bytes
    vmem_limit = int(min(100 << 20, max(16 << 20, budget)))

    flops = 2 * padded_batch * sum(w.shape[0] * w.shape[1] for w in weights)
    transcendentals = padded_batch * sum(widths[:-1]) if activation == "tanh" else 0
    bytes_accessed = x.size * itemsize + param_bytes + padded_batch * out_pad * 4

    kernel = functools.partial(
        _mlp_kernel, num_layers=num_layers, activation=activation,
        compute_dtype=compute_dtype)

    out = pl.pallas_call(
        kernel,
        out_shape=jax.ShapeDtypeStruct((padded_batch, out_pad), jnp.float32),
        grid=(padded_batch // tm,),
        in_specs=in_specs,
        out_specs=out_spec,
        compiler_params=pltpu.CompilerParams(
            dimension_semantics=("parallel",),
            vmem_limit_bytes=vmem_limit),
        cost_estimate=pl.CostEstimate(
            flops=flops, transcendentals=transcendentals,
            bytes_accessed=bytes_accessed),
    )(*args)

    return out[:batch, :out_dim]


def _reference_forward(x, weights, biases, activation="relu"):
    h = x
    for i, (w, b) in enumerate(zip(weights, biases)):
        if i:
            h = _activation(h, activation)
        h = h @ w + b
    return h


if __name__ == "__main__":
    # Module config (small, consistent with the PyTorch __init__):
    #   input_size = 64, layers = [32, 32], output_size = 3
    input_size = 64
    layers = [32, 32]
    output_size = 3

    key = jax.random.PRNGKey(0)
    sizes = [input_size] + layers + [output_size]

    weights, biases = [], []
    for i in range(len(sizes) - 1):
        key, kw, kb = jax.random.split(key, 3)
        fan_in, fan_out = sizes[i], sizes[i + 1]
        weights.append(
            jax.random.uniform(kw, (fan_in, fan_out), jnp.float32, -0.1, 0.1))
        biases.append(
            jax.random.uniform(kb, (fan_out,), jnp.float32, -0.1, 0.1))

    # 1) Small batch, f32 compute — tight check vs reference (relu).
    key, kx = jax.random.split(key)
    x_small = jax.random.normal(kx, (2, input_size), jnp.float32)
    out = jax.block_until_ready(
        simple_mlp_forward(x_small, weights, biases, "relu",
                           compute_dtype=jnp.float32))
    ref = _reference_forward(x_small, weights, biases, "relu")
    assert out.shape == (2, output_size)
    assert jnp.allclose(out, ref, atol=1e-5, rtol=1e-5), "relu f32 mismatch"

    # 2) tanh activation path, f32.
    out_t = jax.block_until_ready(
        simple_mlp_forward(x_small, weights, biases, "tanh",
                           compute_dtype=jnp.float32))
    ref_t = _reference_forward(x_small, weights, biases, "tanh")
    assert jnp.allclose(out_t, ref_t, atol=1e-5, rtol=1e-5), "tanh f32 mismatch"

    # 3) Multi-tile grid + batch padding + bf16 MXU inputs (f32 accumulation).
    key, kx2 = jax.random.split(key)
    x_big = jax.random.normal(kx2, (300, input_size), jnp.float32)
    out_b = jax.block_until_ready(
        simple_mlp_forward(x_big, weights, biases, "relu",
                           compute_dtype=jnp.bfloat16, block_m=128))
    ref_b = _reference_forward(x_big, weights, biases, "relu")
    assert out_b.shape == (300, output_size)
    assert jnp.allclose(out_b, ref_b, atol=3e-2, rtol=3e-2), "relu bf16 mismatch"

    print("KERNEL_OK")
</pallas_src>

<mosaic_0001>
module attributes {stable_mosaic.version = 11 : i64} {
  func.func @_mlp_kernel(%arg0: i32, %arg1: memref<8x64xf32, #tpu.memory_space<vmem>>, %arg2: memref<64x32xf32, #tpu.memory_space<vmem>>, %arg3: memref<1x32xf32, #tpu.memory_space<vmem>>, %arg4: memref<32x32xf32, #tpu.memory_space<vmem>>, %arg5: memref<1x32xf32, #tpu.memory_space<vmem>>, %arg6: memref<32x128xf32, #tpu.memory_space<vmem>>, %arg7: memref<1x128xf32, #tpu.memory_space<vmem>>, %arg8: memref<8x128xf32, #tpu.memory_space<vmem>>) attributes {dimension_semantics = [#tpu.dimension_semantics<parallel>], iteration_bounds = array<i64: 1>, scalar_prefetch = 0 : i64, scratch_operands = 0 : i64, tpu.core_type = #tpu.core_type<tc>, window_params = [{transform_indices = @transform_0, window_bounds = array<i64: 8, 64>}, {pipeline_mode = #tpu.pipeline_mode<synchronous>, transform_indices = @transform_1, window_bounds = array<i64: 64, 32>}, {pipeline_mode = #tpu.pipeline_mode<synchronous>, transform_indices = @transform_2, window_bounds = array<i64: 1, 32>}, {pipeline_mode = #tpu.pipeline_mode<synchronous>, transform_indices = @transform_3, window_bounds = array<i64: 32, 32>}, {pipeline_mode = #tpu.pipeline_mode<synchronous>, transform_indices = @transform_4, window_bounds = array<i64: 1, 32>}, {pipeline_mode = #tpu.pipeline_mode<synchronous>, transform_indices = @transform_5, window_bounds = array<i64: 32, 128>}, {pipeline_mode = #tpu.pipeline_mode<synchronous>, transform_indices = @transform_6, window_bounds = array<i64: 1, 128>}, {transform_indices = @transform_7, window_bounds = array<i64: 8, 128>}]} {
    %c0 = arith.constant 0 : index
    %c0_0 = arith.constant 0 : index
    %0 = vector.load %arg1[%c0, %c0_0] : memref<8x64xf32, #tpu.memory_space<vmem>>, vector<8x64xf32>
    %c0_1 = arith.constant 0 : index
    %c0_2 = arith.constant 0 : index
    %1 = vector.load %arg2[%c0_1, %c0_2] : memref<64x32xf32, #tpu.memory_space<vmem>>, vector<64x32xf32>
    %c0_3 = arith.constant 0 : index
    %c0_4 = arith.constant 0 : index
    %2 = vector.load %arg3[%c0_3, %c0_4] : memref<1x32xf32, #tpu.memory_space<vmem>>, vector<1x32xf32>
    %cst = arith.constant dense<0.000000e+00> : vector<8x32xf32>
    %3 = tpu.matmul %0, %1, %cst {dimension_numbers = #tpu.dot_dimension_numbers<[1], [0], [0], [1], [0, 0, 1, 1], [], []>} : vector<8x64xf32>, vector<64x32xf32>, vector<8x32xf32> -> vector<8x32xf32>
    %4 = vector.broadcast %2 : vector<1x32xf32> to vector<8x32xf32>
    %5 = arith.addf %3, %4 : vector<8x32xf32>
    %cst_5 = arith.constant 0.000000e+00 : f32
    %6 = vector.broadcast %cst_5 : f32 to vector<8x32xf32>
    %7 = arith.maximumf %5, %6 : vector<8x32xf32>
    %c0_6 = arith.constant 0 : index
    %c0_7 = arith.constant 0 : index
    %8 = vector.load %arg4[%c0_6, %c0_7] : memref<32x32xf32, #tpu.memory_space<vmem>>, vector<32x32xf32>
    %c0_8 = arith.constant 0 : index
    %c0_9 = arith.constant 0 : index
    %9 = vector.load %arg5[%c0_8, %c0_9] : memref<1x32xf32, #tpu.memory_space<vmem>>, vector<1x32xf32>
    %cst_10 = arith.constant dense<0.000000e+00> : vector<8x32xf32>
    %10 = tpu.matmul %7, %8, %cst_10 {dimension_numbers = #tpu.dot_dimension_numbers<[1], [0], [0], [1], [0, 0, 1, 1], [], []>} : vector<8x32xf32>, vector<32x32xf32>, vector<8x32xf32> -> vector<8x32xf32>
    %11 = vector.broadcast %9 : vector<1x32xf32> to vector<8x32xf32>
    %12 = arith.addf %10, %11 : vector<8x32xf32>
    %cst_11 = arith.constant 0.000000e+00 : f32
    %13 = vector.broadcast %cst_11 : f32 to vector<8x32xf32>
    %14 = arith.maximumf %12, %13 : vector<8x32xf32>
    %c0_12 = arith.constant 0 : index
    %c0_13 = arith.constant 0 : index
    %15 = vector.load %arg6[%c0_12, %c0_13] : memref<32x128xf32, #tpu.memory_space<vmem>>, vector<32x128xf32>
    %c0_14 = arith.constant 0 : index
    %c0_15 = arith.constant 0 : index
    %16 = vector.load %arg7[%c0_14, %c0_15] : memref<1x128xf32, #tpu.memory_space<vmem>>, vector<1x128xf32>
    %cst_16 = arith.constant dense<0.000000e+00> : vector<8x128xf32>
    %17 = tpu.matmul %14, %15, %cst_16 {dimension_numbers = #tpu.dot_dimension_numbers<[1], [0], [0], [1], [0, 0, 1, 1], [], []>} : vector<8x32xf32>, vector<32x128xf32>, vector<8x128xf32> -> vector<8x128xf32>
    %18 = vector.broadcast %16 : vector<1x128xf32> to vector<8x128xf32>
    %19 = arith.addf %17, %18 : vector<8x128xf32>
    %c0_17 = arith.constant 0 : index
    %c0_18 = arith.constant 0 : index
    %20 = vector.load %arg8[%c0_17, %c0_18] : memref<8x128xf32, #tpu.memory_space<vmem>>, vector<8x128xf32>
    tpu.vector_store %arg8[%c0_17, %c0_18], %19 {strides = array<i32>} : memref<8x128xf32, #tpu.memory_space<vmem>>, vector<8x128xf32>,
    return
  }
  func.func @transform_0(%arg0: i32) -> (i32, i32) {
    %c0_i32 = arith.constant 0 : i32
    %c0_i32_0 = arith.constant 0 : i32
    return %arg0, %c0_i32 : i32, i32
  }
  func.func @transform_1(%arg0: i32) -> (i32, i32) {
    %c0_i32 = arith.constant 0 : i32
    %c0_i32_0 = arith.constant 0 : i32
    %c0_i32_1 = arith.constant 0 : i32
    return %c0_i32, %c0_i32_0 : i32, i32
  }
  func.func @transform_2(%arg0: i32) -> (i32, i32) {
    %c0_i32 = arith.constant 0 : i32
    %c0_i32_0 = arith.constant 0 : i32
    %c0_i32_1 = arith.constant 0 : i32
    return %c0_i32, %c0_i32_0 : i32, i32
  }
  func.func @transform_3(%arg0: i32) -> (i32, i32) {
    %c0_i32 = arith.constant 0 : i32
    %c0_i32_0 = arith.constant 0 : i32
    %c0_i32_1 = arith.constant 0 : i32
    return %c0_i32, %c0_i32_0 : i32, i32
  }
  func.func @transform_4(%arg0: i32) -> (i32, i32) {
    %c0_i32 = arith.constant 0 : i32
    %c0_i32_0 = arith.constant 0 : i32
    %c0_i32_1 = arith.constant 0 : i32
    return %c0_i32, %c0_i32_0 : i32, i32
  }
  func.func @transform_5(%arg0: i32) -> (i32, i32) {
    %c0_i32 = arith.constant 0 : i32
    %c0_i32_0 = arith.constant 0 : i32
    %c0_i32_1 = arith.constant 0 : i32
    return %c0_i32, %c0_i32_0 : i32, i32
  }
  func.func @transform_6(%arg0: i32) -> (i32, i32) {
    %c0_i32 = arith.constant 0 : i32
    %c0_i32_0 = arith.constant 0 : i32
    %c0_i32_1 = arith.constant 0 : i32
    return %c0_i32, %c0_i32_0 : i32, i32
  }
  func.func @transform_7(%arg0: i32) -> (i32, i32) {
    %c0_i32 = arith.constant 0 : i32
    %c0_i32_0 = arith.constant 0 : i32
    return %arg0, %c0_i32 : i32, i32
  }
}

</mosaic_0001>

<bundles_post_ra>
// kernel: tpu_custom_call.1
= control target key start
LH: loop header
LB: loop body
LE: loop exit
PB: predicated region body
PF: predicated region fallthrough
CT: control target
= control target key end

     0   :  { %s283_s0 = inlined_call_operand.vmem [shape: f32[8,64], index: 0, kind: input, shape index: {}]   ;;  %s284_s1 = inlined_call_operand.vmem [shape: f32[64,32], index: 1, kind: input, shape index: {}]   ;;  %s285_s2 = inlined_call_operand.vmem [shape: f32[1,32], index: 2, kind: input, shape index: {}]   ;;  %s286_s3 = inlined_call_operand.vmem [shape: f32[32,32], index: 3, kind: input, shape index: {}]   ;;  %s287_s4 = inlined_call_operand.vmem [shape: f32[1,32], index: 4, kind: input, shape index: {}]   ;;  %s288_s5 = inlined_call_operand.vmem [shape: f32[32,128], index: 5, kind: input, shape index: {}]   ;;  %s289_s6 = inlined_call_operand.vmem [shape: f32[1,128], index: 6, kind: input, shape index: {}]   ;;  %s290_s7 = inlined_call_operand.hbm [shape: f32[8,128], index: 7, kind: output, shape index: {}]  }
   0x1   :  { %v35_v0 = vld [vmem:[%s284_s1 + $0x38] sm:$0xff]  ;;  %v34_v1 = vld [vmem:[%s284_s1 + $0x30] sm:$0xff]  ;;  %v33_v2 = vld [vmem:[%s284_s1 + $0x28] sm:$0xff] }
   0x2   :  { %52 = vmatpush.msra.mxu0 %v35_v0  ;;  %v32_v3 = vld [vmem:[%s284_s1 + $0x20] sm:$0xff]  ;;  %v68_v4 = vld [vmem:[%s286_s3 + $0x18] sm:$0xff] }
   0x3   :  { %89 = vmatpush.msra.mxu1 %v68_v4 }
   0x4   :  { %53 = vmatpush.msra.mxu0 %v34_v1 }
   0x5   :  { %12 = vsyncpa [#allocation3], 0  ;;  %v31_v5 = vld [vmem:[%s284_s1 + $0x18] sm:$0xff]  ;;  %v30_v6 = vld [vmem:[%s284_s1 + $0x10] sm:$0xff]  ;;  %vm40_vm0 = vcmask 523264   ;;  %vm73_vm1 = vcmask 261120  }
   0x6   :  { %54 = vmatpush.msra.mxu0 %v33_v2  ;;  %v29_v7 = vld [vmem:[%s284_s1 + $0x8] sm:$0xff]  ;;  %v28_v8 = vld [vmem:[%s284_s1] sm:$0xff]  ;;  %v67_v10 = vld [vmem:[%s286_s3 + $0x10] sm:$0xff]  ;;  %s179_s14 = smov [#allocation2]   ;;  %s137_s18 = sshll.u32 %s290_s7, 4  ;;  %s138_s18 = int_to_ptr.hbm [resolvable:$true] %s137_s18 }
   0x7   :  { %v27_v9 = vld [vmem:[%s283_s0] sm:$0xff]  ;;  %90 = vmatpush.msra.mxu1 %v67_v10  ;;  %v66_v11 = vld [vmem:[%s286_s3 + $0x8] sm:$0xff]  ;;  %v101_v13 = vld [vmem:[%s288_s5 + $0x18] sm:$0xff]  ;;  %s135_s15 = sshll.u32 %s179_s14, 4  ;;  %s136_s15 = int_to_ptr.vmem [resolvable:$true] %s135_s15 }
   0x8   :  { %55 = vmatpush.msra.mxu0 %v32_v3  ;;  %v65_v12 = vld [vmem:[%s286_s3] sm:$0xff]  ;;  %121 = vmatpush.msra.mxu2 %v101_v13  ;;  %v100_v18 = vld [vmem:[%s288_s5 + $0x10] sm:$0xff]  ;;  %v99_v19 = vld [vmem:[%s288_s5 + $0x8] sm:$0xff] }
   0x9   :  { %91 = vmatpush.msra.mxu1 %v66_v11  ;;  %v150_v14 = vld [vmem:[%s285_s2] ss:$0 sm:$0xff] }
   0xa   :  { %56 = vmatpush.msra.mxu0 %v31_v5  ;;  %122 = vmatpush.msra.mxu2 %v100_v18  ;;  %v98_v20 = vld [vmem:[%s288_s5] sm:$0xff] }
   0xb   :  { %92 = vmatpush.msra.mxu1 %v65_v12  ;;  %v151_v21 = vld [vmem:[%s287_s4] ss:$0 sm:$0xff] }
   0xc   :  { %57 = vmatpush.msra.mxu0 %v30_v6  ;;  %123 = vmatpush.msra.mxu2 %v99_v19  ;;  %v152_v25 = vld [vmem:[%s289_s6] ss:$0 sm:$0xff] }
   0xe   :  { %58 = vmatpush.msra.mxu0 %v29_v7  ;;  %124 = vmatpush.msra.mxu2 %v98_v20 }
  0x10   :  { %59 = vmatpush.msra.mxu0 %v28_v8 }
  0x11   :  { %146 = vmatmul.msk.f32.vlgmr.msra.gmra.mxu0 %vm40_vm0, %v27_v9 }
  0x8e   :  { %v61_v15 = vpop.f32.mrf.mxu0 }
  0x8f   :  { %v62_v16 = vadd.f32 %v150_v14, %v61_v15 }
  0x91   :  { %v64_v17 = vmax.f32 %v62_v16, 0.0 }
  0x93   :  { %147 = vmatmul.msk.f32.vlgmr.msra.gmra.mxu1 %vm73_vm1, %v64_v17 }
 0x110   :  { %v94_v22 = vpop.f32.mrf.mxu1 }
 0x111   :  { %v95_v23 = vadd.f32 %v151_v21, %v94_v22 }
 0x113   :  { %v97_v24 = vmax.f32 %v95_v23, 0.0 }
 0x115   :  { %148 = vmatmul.msk.f32.vlgmr.msra.gmra.mxu2 %vm73_vm1, %v97_v24 }
 0x198   :  { %v126_v26 = vpop.f32.mrf.mxu2 }
 0x199   :  { %v127_v27 = vadd.f32 %v152_v25, %v126_v26 }
 0x19b   :  { %129 = vst [vmem:[#allocation2] sm:$0xff] %v127_v27 }
 0x19c   :  { %140 = dma.vmem_to_hbm [thread:$0]  %s136_s15, 128, %s138_s18, [#allocation3]  }
 0x19d   :  { %177 = dma.done.wait [#allocation3], 128  }
 0x19e   :  { %178 = vsyncadd [#allocation3], 4294967168 }
 0x19f   :  { %145 = vsyncpa [#allocation3], 1 }

</bundles_post_ra>
